<compile_context>
chip_gen: v5e
topology: v5e:2x2
jax: 0.10.0
libtpu: 0.0.40
codegen_flags: <defaults>
</compile_context>

<pallas_src>
import jax
import jax.numpy as jnp
from jax import lax
from jax.experimental import pallas as pl
from jax.experimental.pallas import tpu as pltpu


def _gru_kernel(x_ref, h0_ref, wxall_ref, whzr_ref, wwh_ref, out_ref, xp_ref):
    """x_ref: (L*B, I) time-major rows; out_ref: (L, B, H); xp_ref: (L*B, 3H)."""
    L, B, H = out_ref.shape

    # Hoisted x-projection for ALL timesteps: one (L*B, I) @ (I, 3H) matmul.
    # Column layout of xp: [ x@Wz_x | x@Wr_x | x@Ww_x ].
    xp_ref[...] = jnp.dot(x_ref[...].astype(jnp.float32), wxall_ref[...],
                          preferred_element_type=jnp.float32)

    wh_zr = whzr_ref[...]          # (H, 2H) = [Wz_h | Wr_h]
    wwh = wwh_ref[...]             # (H, H)
    h0 = h0_ref[...].astype(jnp.float32)

    def step(t, h):
        xp_t = xp_ref[pl.ds(t * B, B), :]                       # (B, 3H)
        # One fused matmul for both z and r hidden contributions.
        hg = jnp.dot(h, wh_zr, preferred_element_type=jnp.float32)   # (B, 2H)
        z = jax.nn.sigmoid(hg[:, :H] + xp_t[:, :H])
        r = jax.nn.sigmoid(hg[:, H:] + xp_t[:, H:2 * H])
        h_hat = jnp.tanh(
            jnp.dot(r * h, wwh, preferred_element_type=jnp.float32)
            + xp_t[:, 2 * H:])
        h_new = (1.0 - z) * h + z * h_hat
        out_ref[t] = h_new.astype(out_ref.dtype)                # VMEM store
        return h_new

    lax.fori_loop(0, L, step, h0, unroll=True)


def gru_forward(x_blI, h0, params):
    """x_blI: (B, L, I) float32 (PyTorch layout); h0: (B, H). Returns (L, B, H)."""
    B, L, I = x_blI.shape
    _, H = h0.shape
    wzh, wzx, wrh, wrx, wwh, wwx = params

    # Fuse weights once (no recurrence dependence).
    wx_all = jnp.concatenate([wzx, wrx, wwx], axis=1)   # (I, 3H)
    wh_zr = jnp.concatenate([wzh, wrh], axis=1)         # (H, 2H)

    # Time-major rows so the hoisted x-projection is a single flat matmul.
    x2d = jnp.transpose(x_blI, (1, 0, 2)).reshape(L * B, I)

    flops = 2 * L * B * (I * 3 * H + H * 2 * H + H * H) + 10 * L * B * H
    transcendentals = 3 * L * B * H
    bytes_accessed = 4 * (L * B * I + B * H + I * 3 * H + H * 2 * H + H * H
                          + L * B * H)

    out = pl.pallas_call(
        _gru_kernel,
        out_shape=jax.ShapeDtypeStruct((L, B, H), jnp.float32),
        in_specs=[
            pl.BlockSpec(memory_space=pltpu.MemorySpace.VMEM),   # x2d
            pl.BlockSpec(memory_space=pltpu.MemorySpace.VMEM),   # h0
            pl.BlockSpec(memory_space=pltpu.MemorySpace.VMEM),   # Wx_all
            pl.BlockSpec(memory_space=pltpu.MemorySpace.VMEM),   # Wh_zr
            pl.BlockSpec(memory_space=pltpu.MemorySpace.VMEM),   # Ww_h
        ],
        out_specs=pl.BlockSpec(memory_space=pltpu.MemorySpace.VMEM),
        scratch_shapes=[pltpu.VMEM((L * B, 3 * H), jnp.float32)],
        cost_estimate=pl.CostEstimate(flops=flops,
                                      transcendentals=transcendentals,
                                      bytes_accessed=bytes_accessed),
    )(x2d, h0, wx_all, wh_zr, wwh)
    return out


def init_params(key, input_size, hidden_size):
    """Init matching nn.Linear(I+H, H, bias=False) weight shapes.

    PyTorch weight W has shape (H, I+H) and acts on concat([h, x]).
    We return pre-transposed splits: W_h = W[:, :H].T -> (H, H),
                                     W_x = W[:, H:].T -> (I, H).
    """
    bound = 1.0 / jnp.sqrt(jnp.float32(input_size + hidden_size))
    keys = jax.random.split(key, 3)
    params = []
    for k in keys:
        W = jax.random.uniform(k, (hidden_size, input_size + hidden_size),
                               jnp.float32, -bound, bound)
        params.append(W[:, :hidden_size].T)   # h-part (H, H)
        params.append(W[:, hidden_size:].T)   # x-part (I, H)
    return tuple(params)


def gru_reference(x_blI, h0, params):
    """Plain-JAX reference of the PyTorch forward loop."""
    wzh, wzx, wrh, wrx, wwh, wwx = params

    def step(h, x_t):
        z = jax.nn.sigmoid(h @ wzh + x_t @ wzx)
        r = jax.nn.sigmoid(h @ wrh + x_t @ wrx)
        h_hat = jnp.tanh((r * h) @ wwh + x_t @ wwx)
        h_new = (1.0 - z) * h + z * h_hat
        return h_new, h_new

    _, out = jax.lax.scan(step, h0, jnp.transpose(x_blI, (1, 0, 2)))
    return out  # (L, B, H)


if __name__ == "__main__":
    # Small shapes consistent with the module: batch=2, seq=8, input=8, hidden=32.
    B, L, I, H = 2, 8, 8, 32
    key = jax.random.PRNGKey(0)
    k_x, k_h, k_p = jax.random.split(key, 3)

    x = jax.random.normal(k_x, (B, L, I), jnp.float32)   # PyTorch (B, L, I)
    h0 = jax.random.normal(k_h, (B, H), jnp.float32)
    params = init_params(k_p, I, H)

    out = gru_forward(x, h0, params)
    out = jax.block_until_ready(out)

    ref = gru_reference(x, h0, params)
    assert out.shape == (L, B, H)
    assert jnp.allclose(out, ref, atol=1e-5, rtol=1e-5)

    print("KERNEL_OK")
</pallas_src>

<mosaic_0001>
module attributes {stable_mosaic.version = 11 : i64} {
  func.func @_gru_kernel(%arg0: memref<16x8xf32, #tpu.memory_space<vmem>>, %arg1: memref<2x32xf32, #tpu.memory_space<vmem>>, %arg2: memref<8x96xf32, #tpu.memory_space<vmem>>, %arg3: memref<32x64xf32, #tpu.memory_space<vmem>>, %arg4: memref<32x32xf32, #tpu.memory_space<vmem>>, %arg5: memref<8x2x32xf32, #tpu.memory_space<vmem>>, %arg6: memref<16x96xf32, #tpu.memory_space<vmem>>) attributes {dimension_semantics = [], scalar_prefetch = 0 : i64, scratch_operands = 1 : i64, tpu.core_type = #tpu.core_type<tc>} {
    %c0 = arith.constant 0 : index
    %c0_0 = arith.constant 0 : index
    %0 = vector.load %arg0[%c0, %c0_0] : memref<16x8xf32, #tpu.memory_space<vmem>>, vector<16x8xf32>
    %c0_1 = arith.constant 0 : index
    %c0_2 = arith.constant 0 : index
    %1 = vector.load %arg2[%c0_1, %c0_2] : memref<8x96xf32, #tpu.memory_space<vmem>>, vector<8x96xf32>
    %cst = arith.constant dense<0.000000e+00> : vector<16x96xf32>
    %2 = tpu.matmul %0, %1, %cst {dimension_numbers = #tpu.dot_dimension_numbers<[1], [0], [0], [1], [0, 0, 1, 1], [], []>} : vector<16x8xf32>, vector<8x96xf32>, vector<16x96xf32> -> vector<16x96xf32>
    %c0_3 = arith.constant 0 : index
    %c0_4 = arith.constant 0 : index
    %3 = vector.load %arg6[%c0_3, %c0_4] : memref<16x96xf32, #tpu.memory_space<vmem>>, vector<16x96xf32>
    tpu.vector_store %arg6[%c0_3, %c0_4], %2 {strides = array<i32>} : memref<16x96xf32, #tpu.memory_space<vmem>>, vector<16x96xf32>,
    %c0_5 = arith.constant 0 : index
    %c0_6 = arith.constant 0 : index
    %4 = vector.load %arg3[%c0_5, %c0_6] : memref<32x64xf32, #tpu.memory_space<vmem>>, vector<32x64xf32>
    %c0_7 = arith.constant 0 : index
    %c0_8 = arith.constant 0 : index
    %5 = vector.load %arg4[%c0_7, %c0_8] : memref<32x32xf32, #tpu.memory_space<vmem>>, vector<32x32xf32>
    %c0_9 = arith.constant 0 : index
    %c0_10 = arith.constant 0 : index
    %6 = vector.load %arg1[%c0_9, %c0_10] : memref<2x32xf32, #tpu.memory_space<vmem>>, vector<2x32xf32>
    %c0_i32 = arith.constant 0 : i32
    %c2_i32 = arith.constant 2 : i32
    %7 = arith.muli %c0_i32, %c2_i32 : i32
    %8 = arith.index_cast %7 : i32 to index
    %c0_11 = arith.constant 0 : index
    %9 = vector.load %arg6[%8, %c0_11] : memref<16x96xf32, #tpu.memory_space<vmem>>, vector<2x96xf32>
    %cst_12 = arith.constant dense<0.000000e+00> : vector<2x64xf32>
    %10 = tpu.matmul %6, %4, %cst_12 {dimension_numbers = #tpu.dot_dimension_numbers<[1], [0], [0], [1], [0, 0, 1, 1], [], []>} : vector<2x32xf32>, vector<32x64xf32>, vector<2x64xf32> -> vector<2x64xf32>
    %11 = vector.extract_strided_slice %10 {offsets = [0, 0], sizes = [2, 32], strides = [1, 1]} : vector<2x64xf32> to vector<2x32xf32>
    %12 = vector.extract_strided_slice %9 {offsets = [0, 0], sizes = [2, 32], strides = [1, 1]} : vector<2x96xf32> to vector<2x32xf32>
    %13 = arith.addf %11, %12 : vector<2x32xf32>
    %14 = arith.negf %13 : vector<2x32xf32>
    %15 = math.exp %14 : vector<2x32xf32>
    %cst_13 = arith.constant 1.000000e+00 : f32
    %16 = vector.broadcast %cst_13 : f32 to vector<2x32xf32>
    %17 = arith.addf %16, %15 : vector<2x32xf32>
    %18 = arith.divf %16, %17 : vector<2x32xf32>
    %19 = vector.extract_strided_slice %10 {offsets = [0, 32], sizes = [2, 32], strides = [1, 1]} : vector<2x64xf32> to vector<2x32xf32>
    %20 = vector.extract_strided_slice %9 {offsets = [0, 32], sizes = [2, 32], strides = [1, 1]} : vector<2x96xf32> to vector<2x32xf32>
    %21 = arith.addf %19, %20 : vector<2x32xf32>
    %22 = arith.negf %21 : vector<2x32xf32>
    %23 = math.exp %22 : vector<2x32xf32>
    %cst_14 = arith.constant 1.000000e+00 : f32
    %24 = vector.broadcast %cst_14 : f32 to vector<2x32xf32>
    %25 = arith.addf %24, %23 : vector<2x32xf32>
    %26 = arith.divf %24, %25 : vector<2x32xf32>
    %27 = arith.mulf %26, %6 : vector<2x32xf32>
    %cst_15 = arith.constant dense<0.000000e+00> : vector<2x32xf32>
    %28 = tpu.matmul %27, %5, %cst_15 {dimension_numbers = #tpu.dot_dimension_numbers<[1], [0], [0], [1], [0, 0, 1, 1], [], []>} : vector<2x32xf32>, vector<32x32xf32>, vector<2x32xf32> -> vector<2x32xf32>
    %29 = vector.extract_strided_slice %9 {offsets = [0, 64], sizes = [2, 32], strides = [1, 1]} : vector<2x96xf32> to vector<2x32xf32>
    %30 = arith.addf %28, %29 : vector<2x32xf32>
    %31 = math.tanh %30 : vector<2x32xf32>
    %cst_16 = arith.constant 1.000000e+00 : f32
    %32 = vector.broadcast %cst_16 : f32 to vector<2x32xf32>
    %33 = arith.subf %32, %18 : vector<2x32xf32>
    %34 = arith.mulf %33, %6 : vector<2x32xf32>
    %35 = arith.mulf %18, %31 : vector<2x32xf32>
    %36 = arith.addf %34, %35 : vector<2x32xf32>
    %37 = arith.index_cast %c0_i32 : i32 to index
    %c0_17 = arith.constant 0 : index
    %c0_18 = arith.constant 0 : index
    %38 = vector.load %arg5[%37, %c0_17, %c0_18] : memref<8x2x32xf32, #tpu.memory_space<vmem>>, vector<1x2x32xf32>
    %39 = vector.shape_cast %38 : vector<1x2x32xf32> to vector<2x32xf32>
    %40 = vector.shape_cast %36 : vector<2x32xf32> to vector<1x2x32xf32>
    tpu.vector_store %arg5[%37, %c0_17, %c0_18], %40 {strides = array<i32>} : memref<8x2x32xf32, #tpu.memory_space<vmem>>, vector<1x2x32xf32>,
    %c1_i32 = arith.constant 1 : i32
    %c2_i32_19 = arith.constant 2 : i32
    %41 = arith.muli %c1_i32, %c2_i32_19 : i32
    %42 = arith.index_cast %41 : i32 to index
    %c0_20 = arith.constant 0 : index
    %43 = vector.load %arg6[%42, %c0_20] : memref<16x96xf32, #tpu.memory_space<vmem>>, vector<2x96xf32>
    %cst_21 = arith.constant dense<0.000000e+00> : vector<2x64xf32>
    %44 = tpu.matmul %36, %4, %cst_21 {dimension_numbers = #tpu.dot_dimension_numbers<[1], [0], [0], [1], [0, 0, 1, 1], [], []>} : vector<2x32xf32>, vector<32x64xf32>, vector<2x64xf32> -> vector<2x64xf32>
    %45 = vector.extract_strided_slice %44 {offsets = [0, 0], sizes = [2, 32], strides = [1, 1]} : vector<2x64xf32> to vector<2x32xf32>
    %46 = vector.extract_strided_slice %43 {offsets = [0, 0], sizes = [2, 32], strides = [1, 1]} : vector<2x96xf32> to vector<2x32xf32>
    %47 = arith.addf %45, %46 : vector<2x32xf32>
    %48 = arith.negf %47 : vector<2x32xf32>
    %49 = math.exp %48 : vector<2x32xf32>
    %cst_22 = arith.constant 1.000000e+00 : f32
    %50 = vector.broadcast %cst_22 : f32 to vector<2x32xf32>
    %51 = arith.addf %50, %49 : vector<2x32xf32>
    %52 = arith.divf %50, %51 : vector<2x32xf32>
    %53 = vector.extract_strided_slice %44 {offsets = [0, 32], sizes = [2, 32], strides = [1, 1]} : vector<2x64xf32> to vector<2x32xf32>
    %54 = vector.extract_strided_slice %43 {offsets = [0, 32], sizes = [2, 32], strides = [1, 1]} : vector<2x96xf32> to vector<2x32xf32>
    %55 = arith.addf %53, %54 : vector<2x32xf32>
    %56 = arith.negf %55 : vector<2x32xf32>
    %57 = math.exp %56 : vector<2x32xf32>
    %cst_23 = arith.constant 1.000000e+00 : f32
    %58 = vector.broadcast %cst_23 : f32 to vector<2x32xf32>
    %59 = arith.addf %58, %57 : vector<2x32xf32>
    %60 = arith.divf %58, %59 : vector<2x32xf32>
    %61 = arith.mulf %60, %36 : vector<2x32xf32>
    %cst_24 = arith.constant dense<0.000000e+00> : vector<2x32xf32>
    %62 = tpu.matmul %61, %5, %cst_24 {dimension_numbers = #tpu.dot_dimension_numbers<[1], [0], [0], [1], [0, 0, 1, 1], [], []>} : vector<2x32xf32>, vector<32x32xf32>, vector<2x32xf32> -> vector<2x32xf32>
    %63 = vector.extract_strided_slice %43 {offsets = [0, 64], sizes = [2, 32], strides = [1, 1]} : vector<2x96xf32> to vector<2x32xf32>
    %64 = arith.addf %62, %63 : vector<2x32xf32>
    %65 = math.tanh %64 : vector<2x32xf32>
    %cst_25 = arith.constant 1.000000e+00 : f32
    %66 = vector.broadcast %cst_25 : f32 to vector<2x32xf32>
    %67 = arith.subf %66, %52 : vector<2x32xf32>
    %68 = arith.mulf %67, %36 : vector<2x32xf32>
    %69 = arith.mulf %52, %65 : vector<2x32xf32>
    %70 = arith.addf %68, %69 : vector<2x32xf32>
    %71 = arith.index_cast %c1_i32 : i32 to index
    %c0_26 = arith.constant 0 : index
    %c0_27 = arith.constant 0 : index
    %72 = vector.load %arg5[%71, %c0_26, %c0_27] : memref<8x2x32xf32, #tpu.memory_space<vmem>>, vector<1x2x32xf32>
    %73 = vector.shape_cast %72 : vector<1x2x32xf32> to vector<2x32xf32>
    %74 = vector.shape_cast %70 : vector<2x32xf32> to vector<1x2x32xf32>
    tpu.vector_store %arg5[%71, %c0_26, %c0_27], %74 {strides = array<i32>} : memref<8x2x32xf32, #tpu.memory_space<vmem>>, vector<1x2x32xf32>,
    %c2_i32_28 = arith.constant 2 : i32
    %c2_i32_29 = arith.constant 2 : i32
    %75 = arith.muli %c2_i32_28, %c2_i32_29 : i32
    %76 = arith.index_cast %75 : i32 to index
    %c0_30 = arith.constant 0 : index
    %77 = vector.load %arg6[%76, %c0_30] : memref<16x96xf32, #tpu.memory_space<vmem>>, vector<2x96xf32>
    %cst_31 = arith.constant dense<0.000000e+00> : vector<2x64xf32>
    %78 = tpu.matmul %70, %4, %cst_31 {dimension_numbers = #tpu.dot_dimension_numbers<[1], [0], [0], [1], [0, 0, 1, 1], [], []>} : vector<2x32xf32>, vector<32x64xf32>, vector<2x64xf32> -> vector<2x64xf32>
    %79 = vector.extract_strided_slice %78 {offsets = [0, 0], sizes = [2, 32], strides = [1, 1]} : vector<2x64xf32> to vector<2x32xf32>
    %80 = vector.extract_strided_slice %77 {offsets = [0, 0], sizes = [2, 32], strides = [1, 1]} : vector<2x96xf32> to vector<2x32xf32>
    %81 = arith.addf %79, %80 : vector<2x32xf32>
    %82 = arith.negf %81 : vector<2x32xf32>
    %83 = math.exp %82 : vector<2x32xf32>
    %cst_32 = arith.constant 1.000000e+00 : f32
    %84 = vector.broadcast %cst_32 : f32 to vector<2x32xf32>
    %85 = arith.addf %84, %83 : vector<2x32xf32>
    %86 = arith.divf %84, %85 : vector<2x32xf32>
    %87 = vector.extract_strided_slice %78 {offsets = [0, 32], sizes = [2, 32], strides = [1, 1]} : vector<2x64xf32> to vector<2x32xf32>
    %88 = vector.extract_strided_slice %77 {offsets = [0, 32], sizes = [2, 32], strides = [1, 1]} : vector<2x96xf32> to vector<2x32xf32>
    %89 = arith.addf %87, %88 : vector<2x32xf32>
    %90 = arith.negf %89 : vector<2x32xf32>
    %91 = math.exp %90 : vector<2x32xf32>
    %cst_33 = arith.constant 1.000000e+00 : f32
    %92 = vector.broadcast %cst_33 : f32 to vector<2x32xf32>
    %93 = arith.addf %92, %91 : vector<2x32xf32>
    %94 = arith.divf %92, %93 : vector<2x32xf32>
    %95 = arith.mulf %94, %70 : vector<2x32xf32>
    %cst_34 = arith.constant dense<0.000000e+00> : vector<2x32xf32>
    %96 = tpu.matmul %95, %5, %cst_34 {dimension_numbers = #tpu.dot_dimension_numbers<[1], [0], [0], [1], [0, 0, 1, 1], [], []>} : vector<2x32xf32>, vector<32x32xf32>, vector<2x32xf32> -> vector<2x32xf32>
    %97 = vector.extract_strided_slice %77 {offsets = [0, 64], sizes = [2, 32], strides = [1, 1]} : vector<2x96xf32> to vector<2x32xf32>
    %98 = arith.addf %96, %97 : vector<2x32xf32>
    %99 = math.tanh %98 : vector<2x32xf32>
    %cst_35 = arith.constant 1.000000e+00 : f32
    %100 = vector.broadcast %cst_35 : f32 to vector<2x32xf32>
    %101 = arith.subf %100, %86 : vector<2x32xf32>
    %102 = arith.mulf %101, %70 : vector<2x32xf32>
    %103 = arith.mulf %86, %99 : vector<2x32xf32>
    %104 = arith.addf %102, %103 : vector<2x32xf32>
    %105 = arith.index_cast %c2_i32_28 : i32 to index
    %c0_36 = arith.constant 0 : index
    %c0_37 = arith.constant 0 : index
    %106 = vector.load %arg5[%105, %c0_36, %c0_37] : memref<8x2x32xf32, #tpu.memory_space<vmem>>, vector<1x2x32xf32>
    %107 = vector.shape_cast %106 : vector<1x2x32xf32> to vector<2x32xf32>
    %108 = vector.shape_cast %104 : vector<2x32xf32> to vector<1x2x32xf32>
    tpu.vector_store %arg5[%105, %c0_36, %c0_37], %108 {strides = array<i32>} : memref<8x2x32xf32, #tpu.memory_space<vmem>>, vector<1x2x32xf32>,
    %c3_i32 = arith.constant 3 : i32
    %c2_i32_38 = arith.constant 2 : i32
    %109 = arith.muli %c3_i32, %c2_i32_38 : i32
    %110 = arith.index_cast %109 : i32 to index
    %c0_39 = arith.constant 0 : index
    %111 = vector.load %arg6[%110, %c0_39] : memref<16x96xf32, #tpu.memory_space<vmem>>, vector<2x96xf32>
    %cst_40 = arith.constant dense<0.000000e+00> : vector<2x64xf32>
    %112 = tpu.matmul %104, %4, %cst_40 {dimension_numbers = #tpu.dot_dimension_numbers<[1], [0], [0], [1], [0, 0, 1, 1], [], []>} : vector<2x32xf32>, vector<32x64xf32>, vector<2x64xf32> -> vector<2x64xf32>
    %113 = vector.extract_strided_slice %112 {offsets = [0, 0], sizes = [2, 32], strides = [1, 1]} : vector<2x64xf32> to vector<2x32xf32>
    %114 = vector.extract_strided_slice %111 {offsets = [0, 0], sizes = [2, 32], strides = [1, 1]} : vector<2x96xf32> to vector<2x32xf32>
    %115 = arith.addf %113, %114 : vector<2x32xf32>
    %116 = arith.negf %115 : vector<2x32xf32>
    %117 = math.exp %116 : vector<2x32xf32>
    %cst_41 = arith.constant 1.000000e+00 : f32
    %118 = vector.broadcast %cst_41 : f32 to vector<2x32xf32>
    %119 = arith.addf %118, %117 : vector<2x32xf32>
    %120 = arith.divf %118, %119 : vector<2x32xf32>
    %121 = vector.extract_strided_slice %112 {offsets = [0, 32], sizes = [2, 32], strides = [1, 1]} : vector<2x64xf32> to vector<2x32xf32>
    %122 = vector.extract_strided_slice %111 {offsets = [0, 32], sizes = [2, 32], strides = [1, 1]} : vector<2x96xf32> to vector<2x32xf32>
    %123 = arith.addf %121, %122 : vector<2x32xf32>
    %124 = arith.negf %123 : vector<2x32xf32>
    %125 = math.exp %124 : vector<2x32xf32>
    %cst_42 = arith.constant 1.000000e+00 : f32
    %126 = vector.broadcast %cst_42 : f32 to vector<2x32xf32>
    %127 = arith.addf %126, %125 : vector<2x32xf32>
    %128 = arith.divf %126, %127 : vector<2x32xf32>
    %129 = arith.mulf %128, %104 : vector<2x32xf32>
    %cst_43 = arith.constant dense<0.000000e+00> : vector<2x32xf32>
    %130 = tpu.matmul %129, %5, %cst_43 {dimension_numbers = #tpu.dot_dimension_numbers<[1], [0], [0], [1], [0, 0, 1, 1], [], []>} : vector<2x32xf32>, vector<32x32xf32>, vector<2x32xf32> -> vector<2x32xf32>
    %131 = vector.extract_strided_slice %111 {offsets = [0, 64], sizes = [2, 32], strides = [1, 1]} : vector<2x96xf32> to vector<2x32xf32>
    %132 = arith.addf %130, %131 : vector<2x32xf32>
    %133 = math.tanh %132 : vector<2x32xf32>
    %cst_44 = arith.constant 1.000000e+00 : f32
    %134 = vector.broadcast %cst_44 : f32 to vector<2x32xf32>
    %135 = arith.subf %134, %120 : vector<2x32xf32>
    %136 = arith.mulf %135, %104 : vector<2x32xf32>
    %137 = arith.mulf %120, %133 : vector<2x32xf32>
    %138 = arith.addf %136, %137 : vector<2x32xf32>
    %139 = arith.index_cast %c3_i32 : i32 to index
    %c0_45 = arith.constant 0 : index
    %c0_46 = arith.constant 0 : index
    %140 = vector.load %arg5[%139, %c0_45, %c0_46] : memref<8x2x32xf32, #tpu.memory_space<vmem>>, vector<1x2x32xf32>
    %141 = vector.shape_cast %140 : vector<1x2x32xf32> to vector<2x32xf32>
    %142 = vector.shape_cast %138 : vector<2x32xf32> to vector<1x2x32xf32>
    tpu.vector_store %arg5[%139, %c0_45, %c0_46], %142 {strides = array<i32>} : memref<8x2x32xf32, #tpu.memory_space<vmem>>, vector<1x2x32xf32>,
    %c4_i32 = arith.constant 4 : i32
    %c2_i32_47 = arith.constant 2 : i32
    %143 = arith.muli %c4_i32, %c2_i32_47 : i32
    %144 = arith.index_cast %143 : i32 to index
    %c0_48 = arith.constant 0 : index
    %145 = vector.load %arg6[%144, %c0_48] : memref<16x96xf32, #tpu.memory_space<vmem>>, vector<2x96xf32>
    %cst_49 = arith.constant dense<0.000000e+00> : vector<2x64xf32>
    %146 = tpu.matmul %138, %4, %cst_49 {dimension_numbers = #tpu.dot_dimension_numbers<[1], [0], [0], [1], [0, 0, 1, 1], [], []>} : vector<2x32xf32>, vector<32x64xf32>, vector<2x64xf32> -> vector<2x64xf32>
    %147 = vector.extract_strided_slice %146 {offsets = [0, 0], sizes = [2, 32], strides = [1, 1]} : vector<2x64xf32> to vector<2x32xf32>
    %148 = vector.extract_strided_slice %145 {offsets = [0, 0], sizes = [2, 32], strides = [1, 1]} : vector<2x96xf32> to vector<2x32xf32>
    %149 = arith.addf %147, %148 : vector<2x32xf32>
    %150 = arith.negf %149 : vector<2x32xf32>
    %151 = math.exp %150 : vector<2x32xf32>
    %cst_50 = arith.constant 1.000000e+00 : f32
    %152 = vector.broadcast %cst_50 : f32 to vector<2x32xf32>
    %153 = arith.addf %152, %151 : vector<2x32xf32>
    %154 = arith.divf %152, %153 : vector<2x32xf32>
    %155 = vector.extract_strided_slice %146 {offsets = [0, 32], sizes = [2, 32], strides = [1, 1]} : vector<2x64xf32> to vector<2x32xf32>
    %156 = vector.extract_strided_slice %145 {offsets = [0, 32], sizes = [2, 32], strides = [1, 1]} : vector<2x96xf32> to vector<2x32xf32>
    %157 = arith.addf %155, %156 : vector<2x32xf32>
    %158 = arith.negf %157 : vector<2x32xf32>
    %159 = math.exp %158 : vector<2x32xf32>
    %cst_51 = arith.constant 1.000000e+00 : f32
    %160 = vector.broadcast %cst_51 : f32 to vector<2x32xf32>
    %161 = arith.addf %160, %159 : vector<2x32xf32>
    %162 = arith.divf %160, %161 : vector<2x32xf32>
    %163 = arith.mulf %162, %138 : vector<2x32xf32>
    %cst_52 = arith.constant dense<0.000000e+00> : vector<2x32xf32>
    %164 = tpu.matmul %163, %5, %cst_52 {dimension_numbers = #tpu.dot_dimension_numbers<[1], [0], [0], [1], [0, 0, 1, 1], [], []>} : vector<2x32xf32>, vector<32x32xf32>, vector<2x32xf32> -> vector<2x32xf32>
    %165 = vector.extract_strided_slice %145 {offsets = [0, 64], sizes = [2, 32], strides = [1, 1]} : vector<2x96xf32> to vector<2x32xf32>
    %166 = arith.addf %164, %165 : vector<2x32xf32>
    %167 = math.tanh %166 : vector<2x32xf32>
    %cst_53 = arith.constant 1.000000e+00 : f32
    %168 = vector.broadcast %cst_53 : f32 to vector<2x32xf32>
    %169 = arith.subf %168, %154 : vector<2x32xf32>
    %170 = arith.mulf %169, %138 : vector<2x32xf32>
    %171 = arith.mulf %154, %167 : vector<2x32xf32>
    %172 = arith.addf %170, %171 : vector<2x32xf32>
    %173 = arith.index_cast %c4_i32 : i32 to index
    %c0_54 = arith.constant 0 : index
    %c0_55 = arith.constant 0 : index
    %174 = vector.load %arg5[%173, %c0_54, %c0_55] : memref<8x2x32xf32, #tpu.memory_space<vmem>>, vector<1x2x32xf32>
    %175 = vector.shape_cast %174 : vector<1x2x32xf32> to vector<2x32xf32>
    %176 = vector.shape_cast %172 : vector<2x32xf32> to vector<1x2x32xf32>
    tpu.vector_store %arg5[%173, %c0_54, %c0_55], %176 {strides = array<i32>} : memref<8x2x32xf32, #tpu.memory_space<vmem>>, vector<1x2x32xf32>,
    %c5_i32 = arith.constant 5 : i32
    %c2_i32_56 = arith.constant 2 : i32
    %177 = arith.muli %c5_i32, %c2_i32_56 : i32
    %178 = arith.index_cast %177 : i32 to index
    %c0_57 = arith.constant 0 : index
    %179 = vector.load %arg6[%178, %c0_57] : memref<16x96xf32, #tpu.memory_space<vmem>>, vector<2x96xf32>
    %cst_58 = arith.constant dense<0.000000e+00> : vector<2x64xf32>
    %180 = tpu.matmul %172, %4, %cst_58 {dimension_numbers = #tpu.dot_dimension_numbers<[1], [0], [0], [1], [0, 0, 1, 1], [], []>} : vector<2x32xf32>, vector<32x64xf32>, vector<2x64xf32> -> vector<2x64xf32>
    %181 = vector.extract_strided_slice %180 {offsets = [0, 0], sizes = [2, 32], strides = [1, 1]} : vector<2x64xf32> to vector<2x32xf32>
    %182 = vector.extract_strided_slice %179 {offsets = [0, 0], sizes = [2, 32], strides = [1, 1]} : vector<2x96xf32> to vector<2x32xf32>
    %183 = arith.addf %181, %182 : vector<2x32xf32>
    %184 = arith.negf %183 : vector<2x32xf32>
    %185 = math.exp %184 : vector<2x32xf32>
    %cst_59 = arith.constant 1.000000e+00 : f32
    %186 = vector.broadcast %cst_59 : f32 to vector<2x32xf32>
    %187 = arith.addf %186, %185 : vector<2x32xf32>
    %188 = arith.divf %186, %187 : vector<2x32xf32>
    %189 = vector.extract_strided_slice %180 {offsets = [0, 32], sizes = [2, 32], strides = [1, 1]} : vector<2x64xf32> to vector<2x32xf32>
    %190 = vector.extract_strided_slice %179 {offsets = [0, 32], sizes = [2, 32], strides = [1, 1]} : vector<2x96xf32> to vector<2x32xf32>
    %191 = arith.addf %189, %190 : vector<2x32xf32>
    %192 = arith.negf %191 : vector<2x32xf32>
    %193 = math.exp %192 : vector<2x32xf32>
    %cst_60 = arith.constant 1.000000e+00 : f32
    %194 = vector.broadcast %cst_60 : f32 to vector<2x32xf32>
    %195 = arith.addf %194, %193 : vector<2x32xf32>
    %196 = arith.divf %194, %195 : vector<2x32xf32>
    %197 = arith.mulf %196, %172 : vector<2x32xf32>
    %cst_61 = arith.constant dense<0.000000e+00> : vector<2x32xf32>
    %198 = tpu.matmul %197, %5, %cst_61 {dimension_numbers = #tpu.dot_dimension_numbers<[1], [0], [0], [1], [0, 0, 1, 1], [], []>} : vector<2x32xf32>, vector<32x32xf32>, vector<2x32xf32> -> vector<2x32xf32>
    %199 = vector.extract_strided_slice %179 {offsets = [0, 64], sizes = [2, 32], strides = [1, 1]} : vector<2x96xf32> to vector<2x32xf32>
    %200 = arith.addf %198, %199 : vector<2x32xf32>
    %201 = math.tanh %200 : vector<2x32xf32>
    %cst_62 = arith.constant 1.000000e+00 : f32
    %202 = vector.broadcast %cst_62 : f32 to vector<2x32xf32>
    %203 = arith.subf %202, %188 : vector<2x32xf32>
    %204 = arith.mulf %203, %172 : vector<2x32xf32>
    %205 = arith.mulf %188, %201 : vector<2x32xf32>
    %206 = arith.addf %204, %205 : vector<2x32xf32>
    %207 = arith.index_cast %c5_i32 : i32 to index
    %c0_63 = arith.constant 0 : index
    %c0_64 = arith.constant 0 : index
    %208 = vector.load %arg5[%207, %c0_63, %c0_64] : memref<8x2x32xf32, #tpu.memory_space<vmem>>, vector<1x2x32xf32>
    %209 = vector.shape_cast %208 : vector<1x2x32xf32> to vector<2x32xf32>
    %210 = vector.shape_cast %206 : vector<2x32xf32> to vector<1x2x32xf32>
    tpu.vector_store %arg5[%207, %c0_63, %c0_64], %210 {strides = array<i32>} : memref<8x2x32xf32, #tpu.memory_space<vmem>>, vector<1x2x32xf32>,
    %c6_i32 = arith.constant 6 : i32
    %c2_i32_65 = arith.constant 2 : i32
    %211 = arith.muli %c6_i32, %c2_i32_65 : i32
    %212 = arith.index_cast %211 : i32 to index
    %c0_66 = arith.constant 0 : index
    %213 = vector.load %arg6[%212, %c0_66] : memref<16x96xf32, #tpu.memory_space<vmem>>, vector<2x96xf32>
    %cst_67 = arith.constant dense<0.000000e+00> : vector<2x64xf32>
    %214 = tpu.matmul %206, %4, %cst_67 {dimension_numbers = #tpu.dot_dimension_numbers<[1], [0], [0], [1], [0, 0, 1, 1], [], []>} : vector<2x32xf32>, vector<32x64xf32>, vector<2x64xf32> -> vector<2x64xf32>
    %215 = vector.extract_strided_slice %214 {offsets = [0, 0], sizes = [2, 32], strides = [1, 1]} : vector<2x64xf32> to vector<2x32xf32>
    %216 = vector.extract_strided_slice %213 {offsets = [0, 0], sizes = [2, 32], strides = [1, 1]} : vector<2x96xf32> to vector<2x32xf32>
    %217 = arith.addf %215, %216 : vector<2x32xf32>
    %218 = arith.negf %217 : vector<2x32xf32>
    %219 = math.exp %218 : vector<2x32xf32>
    %cst_68 = arith.constant 1.000000e+00 : f32
    %220 = vector.broadcast %cst_68 : f32 to vector<2x32xf32>
    %221 = arith.addf %220, %219 : vector<2x32xf32>
    %222 = arith.divf %220, %221 : vector<2x32xf32>
    %223 = vector.extract_strided_slice %214 {offsets = [0, 32], sizes = [2, 32], strides = [1, 1]} : vector<2x64xf32> to vector<2x32xf32>
    %224 = vector.extract_strided_slice %213 {offsets = [0, 32], sizes = [2, 32], strides = [1, 1]} : vector<2x96xf32> to vector<2x32xf32>
    %225 = arith.addf %223, %224 : vector<2x32xf32>
    %226 = arith.negf %225 : vector<2x32xf32>
    %227 = math.exp %226 : vector<2x32xf32>
    %cst_69 = arith.constant 1.000000e+00 : f32
    %228 = vector.broadcast %cst_69 : f32 to vector<2x32xf32>
    %229 = arith.addf %228, %227 : vector<2x32xf32>
    %230 = arith.divf %228, %229 : vector<2x32xf32>
    %231 = arith.mulf %230, %206 : vector<2x32xf32>
    %cst_70 = arith.constant dense<0.000000e+00> : vector<2x32xf32>
    %232 = tpu.matmul %231, %5, %cst_70 {dimension_numbers = #tpu.dot_dimension_numbers<[1], [0], [0], [1], [0, 0, 1, 1], [], []>} : vector<2x32xf32>, vector<32x32xf32>, vector<2x32xf32> -> vector<2x32xf32>
    %233 = vector.extract_strided_slice %213 {offsets = [0, 64], sizes = [2, 32], strides = [1, 1]} : vector<2x96xf32> to vector<2x32xf32>
    %234 = arith.addf %232, %233 : vector<2x32xf32>
    %235 = math.tanh %234 : vector<2x32xf32>
    %cst_71 = arith.constant 1.000000e+00 : f32
    %236 = vector.broadcast %cst_71 : f32 to vector<2x32xf32>
    %237 = arith.subf %236, %222 : vector<2x32xf32>
    %238 = arith.mulf %237, %206 : vector<2x32xf32>
    %239 = arith.mulf %222, %235 : vector<2x32xf32>
    %240 = arith.addf %238, %239 : vector<2x32xf32>
    %241 = arith.index_cast %c6_i32 : i32 to index
    %c0_72 = arith.constant 0 : index
    %c0_73 = arith.constant 0 : index
    %242 = vector.load %arg5[%241, %c0_72, %c0_73] : memref<8x2x32xf32, #tpu.memory_space<vmem>>, vector<1x2x32xf32>
    %243 = vector.shape_cast %242 : vector<1x2x32xf32> to vector<2x32xf32>
    %244 = vector.shape_cast %240 : vector<2x32xf32> to vector<1x2x32xf32>
    tpu.vector_store %arg5[%241, %c0_72, %c0_73], %244 {strides = array<i32>} : memref<8x2x32xf32, #tpu.memory_space<vmem>>, vector<1x2x32xf32>,
    %c7_i32 = arith.constant 7 : i32
    %c2_i32_74 = arith.constant 2 : i32
    %245 = arith.muli %c7_i32, %c2_i32_74 : i32
    %246 = arith.index_cast %245 : i32 to index
    %c0_75 = arith.constant 0 : index
    %247 = vector.load %arg6[%246, %c0_75] : memref<16x96xf32, #tpu.memory_space<vmem>>, vector<2x96xf32>
    %cst_76 = arith.constant dense<0.000000e+00> : vector<2x64xf32>
    %248 = tpu.matmul %240, %4, %cst_76 {dimension_numbers = #tpu.dot_dimension_numbers<[1], [0], [0], [1], [0, 0, 1, 1], [], []>} : vector<2x32xf32>, vector<32x64xf32>, vector<2x64xf32> -> vector<2x64xf32>
    %249 = vector.extract_strided_slice %248 {offsets = [0, 0], sizes = [2, 32], strides = [1, 1]} : vector<2x64xf32> to vector<2x32xf32>
    %250 = vector.extract_strided_slice %247 {offsets = [0, 0], sizes = [2, 32], strides = [1, 1]} : vector<2x96xf32> to vector<2x32xf32>
    %251 = arith.addf %249, %250 : vector<2x32xf32>
    %252 = arith.negf %251 : vector<2x32xf32>
    %253 = math.exp %252 : vector<2x32xf32>
    %cst_77 = arith.constant 1.000000e+00 : f32
    %254 = vector.broadcast %cst_77 : f32 to vector<2x32xf32>
    %255 = arith.addf %254, %253 : vector<2x32xf32>
    %256 = arith.divf %254, %255 : vector<2x32xf32>
    %257 = vector.extract_strided_slice %248 {offsets = [0, 32], sizes = [2, 32], strides = [1, 1]} : vector<2x64xf32> to vector<2x32xf32>
    %258 = vector.extract_strided_slice %247 {offsets = [0, 32], sizes = [2, 32], strides = [1, 1]} : vector<2x96xf32> to vector<2x32xf32>
    %259 = arith.addf %257, %258 : vector<2x32xf32>
    %260 = arith.negf %259 : vector<2x32xf32>
    %261 = math.exp %260 : vector<2x32xf32>
    %cst_78 = arith.constant 1.000000e+00 : f32
    %262 = vector.broadcast %cst_78 : f32 to vector<2x32xf32>
    %263 = arith.addf %262, %261 : vector<2x32xf32>
    %264 = arith.divf %262, %263 : vector<2x32xf32>
    %265 = arith.mulf %264, %240 : vector<2x32xf32>
    %cst_79 = arith.constant dense<0.000000e+00> : vector<2x32xf32>
    %266 = tpu.matmul %265, %5, %cst_79 {dimension_numbers = #tpu.dot_dimension_numbers<[1], [0], [0], [1], [0, 0, 1, 1], [], []>} : vector<2x32xf32>, vector<32x32xf32>, vector<2x32xf32> -> vector<2x32xf32>
    %267 = vector.extract_strided_slice %247 {offsets = [0, 64], sizes = [2, 32], strides = [1, 1]} : vector<2x96xf32> to vector<2x32xf32>
    %268 = arith.addf %266, %267 : vector<2x32xf32>
    %269 = math.tanh %268 : vector<2x32xf32>
    %cst_80 = arith.constant 1.000000e+00 : f32
    %270 = vector.broadcast %cst_80 : f32 to vector<2x32xf32>
    %271 = arith.subf %270, %256 : vector<2x32xf32>
    %272 = arith.mulf %271, %240 : vector<2x32xf32>
    %273 = arith.mulf %256, %269 : vector<2x32xf32>
    %274 = arith.addf %272, %273 : vector<2x32xf32>
    %275 = arith.index_cast %c7_i32 : i32 to index
    %c0_81 = arith.constant 0 : index
    %c0_82 = arith.constant 0 : index
    %276 = vector.load %arg5[%275, %c0_81, %c0_82] : memref<8x2x32xf32, #tpu.memory_space<vmem>>, vector<1x2x32xf32>
    %277 = vector.shape_cast %276 : vector<1x2x32xf32> to vector<2x32xf32>
    %278 = vector.shape_cast %274 : vector<2x32xf32> to vector<1x2x32xf32>
    tpu.vector_store %arg5[%275, %c0_81, %c0_82], %278 {strides = array<i32>} : memref<8x2x32xf32, #tpu.memory_space<vmem>>, vector<1x2x32xf32>,
    %c8_i32 = arith.constant 8 : i32
    return
  }
}

</mosaic_0001>

<bundles_post_ra>
// kernel: tpu_custom_call.1
= control target key start
LH: loop header
LB: loop body
LE: loop exit
PB: predicated region body
PF: predicated region fallthrough
CT: control target
= control target key end

     0   :  { %10 = vsyncpa [#allocation4], 0  ;;  %s1171_s0 = inlined_call_operand.vmem [shape: f32[16,8], index: 0, kind: input, shape index: {}]   ;;  %s1172_s1 = inlined_call_operand.vmem [shape: f32[2,32], index: 1, kind: input, shape index: {}]   ;;  %s1173_s2 = inlined_call_operand.vmem [shape: f32[8,96], index: 2, kind: input, shape index: {}]   ;;  %s1174_s3 = inlined_call_operand.hbm [shape: f32[32,64], index: 3, kind: input, shape index: {}]   ;;  %s1175_s4 = inlined_call_operand.hbm [shape: f32[32,32], index: 4, kind: input, shape index: {}]   ;;  %s1176_s5 = inlined_call_operand.hbm [shape: f32[8,2,32], index: 5, kind: output, shape index: {}]  }
   0x1   :  { %11 = vsyncpa [#allocation7], 0 }
   0x2   :  { %12 = vsyncpa [#allocation5], 0  ;;  %s23_s20 = sshll.u32 %s1174_s3, 4  ;;  %s952_s21 = smov [#allocation3]   ;;  %s24_s20 = int_to_ptr.hbm [resolvable:$true] %s23_s20 }
   0x3   :  { %s25_s22 = sshll.u32 %s952_s21, 4  ;;  %s36_s25 = sshll.u32 %s1175_s4, 4  ;;  %s26_s22 = int_to_ptr.vmem [resolvable:$true] %s25_s22  ;;  %s37_s25 = int_to_ptr.hbm [resolvable:$true] %s36_s25 }
   0x4   :  { %s953_s26 = smov 128   ;;  %s954_s27 = smov 8  }
   0x5   :  { %31 = dma.hbm_to_vmem [thread:$0]  %s24_s20, 512, %s26_s22, [#allocation4], %s953_s26, %s953_s26, %s954_s27  }
   0x6   :  { %s955_s28 = smov [#allocation6]  }
   0x7   :  { %s38_s29 = sshll.u32 %s955_s28, 4  ;;  %s39_s29 = int_to_ptr.vmem [resolvable:$true] %s38_s29 }
   0x8   :  { %44 = dma.hbm_to_vmem [thread:$0]  %s37_s25, 512, %s39_s29, [#allocation7], %s953_s26, %s953_s26, %s954_s27  }
   0x9   :  { %946 = dma.done.wait [#allocation4], 512  }
   0xa   :  { %947 = vsyncadd [#allocation4], 4294966784 }
   0xb   :  { %948 = dma.done.wait [#allocation7], 512  }
   0xc   :  { %949 = vsyncadd [#allocation7], 4294966784  ;;  %vm56_vm0 = vcmask 64512   ;;  %v55_v0 = vld [vmem:[%s1173_s2] sm:$0xff]  ;;  %v1003_v2 = vld [vmem:[#allocation3 + $0x18] sm:$0xff]  ;;  %s956_s2 = smov 32  }
   0xd   :  { %v53_v1 = vld [vmem:[%s1171_s0] sm:$0xff]  ;;  %78 = vmatpush.msra.mxu0 %v55_v0  ;;  %115 = vmatpush.msra.mxu1 %v1003_v2  ;;  %v1009_v4 = vld [vmem:[#allocation3 + $0x8] sm:$0xff]  ;;  %v1020_v6 = vld [vmem:[#allocation3] sm:$0xff]  ;;  %vm99_vm1 = vcmask 261120   ;;  %vm86_vm2 = vcmask 785408   ;;  %s958_s9 = smov 96  }
   0xe   :  { %v1006_v3 = vld [vmem:[#allocation3 + $0x10] sm:$0xff]  ;;  %791 = vmatmul.msk.f32.vlgmr.msra.gmra.mxu0 %vm56_vm0, %v53_v1  ;;  %199 = vmatpush.msra.mxu3 %v1003_v2  ;;  %v1040_v26 = vld [vmem:[#allocation6 + $0x18] sm:$0xff]  ;;  %v1046_v28 = vld [vmem:[#allocation6 + $0x8] sm:$0xff]  ;;  %vm181_vm7 = vcmask 254976   ;;  %s777_s15 = sshll.u32 %s1176_s5, 4  ;;  %s960_s16 = smov 2   ;;  %s778_s15 = int_to_ptr.hbm [resolvable:$true] %s777_s15 }
   0xf   :  { %v1014_v5 = vld [vmem:[%s1172_s1] sm:$0x3]  ;;  %116 = vmatpush.msra.mxu1 %v1006_v3  ;;  %367 = vmatpush.msrb.mxu0 %v1003_v2  ;;  %s957_s1 = smov 64   ;;  %v1051_v29 = vld [vmem:[#allocation6] sm:$0xff] }
  0x10   :  { %143 = vrot.lane.b32.xlu0 %v1014_v5, %s956_s2  ;;  %200 = vmatpush.msra.mxu3 %v1006_v3  ;;  %v1042_v27 = vld [vmem:[#allocation6 + $0x10] sm:$0xff] }
  0x11   :  { %117 = vmatpush.msra.mxu1 %v1009_v4  ;;  %368 = vmatpush.msrb.mxu0 %v1006_v3 }
  0x12   :  { %201 = vmatpush.msra.mxu3 %v1009_v4  ;;  %168 = vmatpush.msra.mxu2 %v1040_v26 }
  0x13   :  { %118 = vmatpush.msra.mxu1 %v1020_v6  ;;  %369 = vmatpush.msrb.mxu0 %v1009_v4 }
  0x14   :  { %793 = vmatmul.msk.f32.vlgmr.msra.gmra.mxu1 %vm99_vm1, %v1014_v5  ;;  %202 = vmatpush.msra.mxu3 %v1020_v6 }
  0x15   :  { %370 = vmatpush.msrb.mxu0 %v1020_v6  ;;  %252 = vmatpush.msrb.mxu1 %v1040_v26 }
  0x16   :  { %336 = vmatpush.msrb.mxu3 %v1040_v26  ;;  %169 = vmatpush.msra.mxu2 %v1042_v27 }
  0x17   :  { %535 = vmatpush.msra.mxu0 %v1003_v2  ;;  %253 = vmatpush.msrb.mxu1 %v1042_v27 }
  0x18   :  { %337 = vmatpush.msrb.mxu3 %v1042_v27  ;;  %170 = vmatpush.msra.mxu2 %v1046_v28 }
  0x19   :  { %536 = vmatpush.msra.mxu0 %v1006_v3  ;;  %254 = vmatpush.msrb.mxu1 %v1046_v28 }
  0x1a   :  { %338 = vmatpush.msrb.mxu3 %v1046_v28  ;;  %171 = vmatpush.msra.mxu2 %v1051_v29 }
  0x1b   :  { %537 = vmatpush.msra.mxu0 %v1009_v4  ;;  %255 = vmatpush.msrb.mxu1 %v1051_v29 }
  0x1c   :  { %283 = vmatpush.msrb.mxu2 %v1003_v2  ;;  %339 = vmatpush.msrb.mxu3 %v1051_v29 }
  0x1d   :  { %538 = vmatpush.msra.mxu0 %v1020_v6  ;;  %420 = vmatpush.msra.mxu1 %v1040_v26 }
  0x1e   :  { %284 = vmatpush.msrb.mxu2 %v1006_v3 }
  0x1f   :  { %421 = vmatpush.msra.mxu1 %v1042_v27 }
  0x20   :  { %285 = vmatpush.msrb.mxu2 %v1009_v4 }
  0x21   :  { %422 = vmatpush.msra.mxu1 %v1046_v28 }
  0x22   :  { %286 = vmatpush.msrb.mxu2 %v1020_v6 }
  0x23   :  { %423 = vmatpush.msra.mxu1 %v1051_v29 }
  0x82   :  { %v144_v21 = vpop.permute.xlu0 %143 }
  0x8b   :  { %v80_v7 = vpop.f32.mrf.mxu0 }
  0x8c   :  { %87 = vst.msk [vmem:[#allocation2] sm:$0xff] %vm86_vm2, %v80_v7 }
  0x91   :  { %v120_v8 = vpop.f32.mrf.mxu1 }
  0x93   :  { %v98_v9 = vld [vmem:[#allocation2] sm:$0x3]  ;;  %v183_v39 = vld [vmem:[#allocation2 + $0x2] sm:$0x3]  ;;  %v267_v57 = vld [vmem:[#allocation2 + $0x4] sm:$0x3] }
  0x94   :  { %v123_v10 = vadd.f32 %v120_v8, %v98_v9  ;;  %151 = vrot.lane.b32.xlu1 %v98_v9, %s957_s1  ;;  %v1084_v58 = vld [vmem:[#allocation2 + $0x6] sm:$0x3] }
  0x96   :  { %v794_v11 = vmul.f32 -1.442695, %v123_v10 }
  0x98   :  { %826 = vpow2.f32 %v794_v11 }
  0x9e   :  { %v827_v12 = vpop.eup %826 }
  0x9f   :  { %v127_v13 = vadd.f32 1.0, %v827_v12 }
  0xa1   :  { %828 = vrcp.f32 %v127_v13  ;;  %v139_v17 = vand.u32 2147483648, %v127_v13  ;;  %v137_v19 = vand.u32 2147483647, %v127_v13  ;;  %vm133_vm4 = vweird.f32 %v127_v13 }
  0xa3   :  { %v140_v22 = vor.u32 1.1754944e-38, %v139_v17  ;;  %vm138_vm6 = vcmp.eq.f32.partialorder %v137_v19, 8.507059e+37 }
  0xa7   :  { %v829_v14 = vpop.eup %828 }
  0xa8   :  { %v129_v15 = vmul.f32 %v829_v14, %v127_v13  ;;  %vm134_vm3 = vweird.f32 %v829_v14 }
  0xa9   :  { %vm135_vm5 = vmor %vm133_vm4, %vm134_vm3 }
  0xaa   :  { %v130_v16 = vsub.f32 1.0, %v129_v15 }
  0xac   :  { %v131_v18 = vmul.f32 %v829_v14, %v130_v16 }
  0xae   :  { %v132_v20 = vadd.f32 %v829_v14, %v131_v18 }
  0xb0   :  { %v136_v23 = vsel %vm135_vm5, %v829_v14, %v132_v20 }
  0xb1   :  { %v141_v24 = vsel %vm138_vm6, %v140_v22, %v136_v23 }
  0xb2   :  { %v146_v25 = vmul.f32 %v144_v21, %v141_v24  ;;  %v177_v34 = vsub.f32 1.0, %v141_v24 }
  0xb4   :  { %148 = vrot.lane.b32.xlu0 %v146_v25, %s958_s9  ;;  %v178_v36 = vmul.f32 %v177_v34, %v1014_v5  ;;  %v54_v25 = vld [vmem:[%s1171_s0 + $0x8] sm:$0xff]  ;;  %s959_s0 = smov [#allocation8]  }
  0xb5   :  { %792 = vmatmul.msk.f32.gmra.mxu0 %vm56_vm0, %v54_v25  ;;  %s775_s12 = sshll.u32 %s959_s0, 4  ;;  %s776_s12 = int_to_ptr.vmem [resolvable:$true] %s775_s12 }
 0x106   :  { %v152_v31 = vpop.permute.xlu1 %151 }
 0x126   :  { %v149_v30 = vpop.permute.xlu0 %148 }
 0x127   :  { %795 = vmatmul.msk.f32.vlgmr.msra.gmra.mxu2 %vm99_vm1, %v149_v30 }
 0x128   :  { %451 = vmatpush.msra.mxu2 %v1003_v2 }
 0x12a   :  { %452 = vmatpush.msra.mxu2 %v1006_v3 }
 0x12c   :  { %453 = vmatpush.msra.mxu2 %v1009_v4 }
 0x12e   :  { %454 = vmatpush.msra.mxu2 %v1020_v6 }
 0x1aa   :  { %v173_v32 = vpop.f32.mrf.mxu2 }
 0x1ab   :  { %v174_v33 = vadd.f32 %v173_v32, %v152_v31  ;;  %v83_v31 = vpop.f32.mrf.mxu0 }
 0x1ac   :  { %88 = vst.msk [vmem:[#allocation2 + $0x8] sm:$0xff] %vm86_vm2, %v83_v31 }
 0x1ad   :  { %830 = vtanh.f32 %v174_v33 }
 0x1b3   :  { %v831_v35 = vpop.eup %830  ;;  %v1111_v32 = vld [vmem:[#allocation2 + $0x8] sm:$0x3]  ;;  %v1115_v33 = vld [vmem:[#allocation2 + $0xa] sm:$0x3] }
 0x1b4   :  { %v179_v37 = vmul.f32 %v831_v35, %v141_v24 }
 0x1b6   :  { %v180_v38 = vadd.f32 %v179_v37, %v178_v36 }
 0x1b8   :  { %227 = vrot.lane.b32.xlu1 %v180_v38, %s956_s2  ;;  %182 = vst.msk [vmem:[#allocation8] sm:$0x3] %vm181_vm7, %v180_v38  ;;  %796 = vmatmul.msk.f32.vlgmr.msra.gmra.mxu3 %vm99_vm1, %v180_v38 }
 0x1b9   :  { %504 = vmatpush.msra.mxu3 %v1040_v26 }
 0x1bb   :  { %505 = vmatpush.msra.mxu3 %v1042_v27 }
 0x1bd   :  { %506 = vmatpush.msra.mxu3 %v1046_v28 }
 0x1bf   :  { %507 = vmatpush.msra.mxu3 %v1051_v29 }
 0x22a   :  { %v228_v54 = vpop.permute.xlu1 %227 }
 0x23b   :  { %v204_v40 = vpop.f32.mrf.mxu3 }
 0x23c   :  { %v207_v41 = vadd.f32 %v204_v40, %v183_v39 }
 0x23e   :  { %v797_v42 = vmul.f32 -1.442695, %v207_v41 }
 0x240   :  { %832 = vpow2.f32 %v797_v42  ;;  %v1126_v42 = vld [vmem:[#allocation2 + $0xc] sm:$0x3] }
 0x246   :  { %v833_v43 = vpop.eup %832 }
 0x247   :  { %v211_v44 = vadd.f32 1.0, %v833_v43  ;;  %v1130_v43 = vld [vmem:[#allocation2 + $0xe] sm:$0x3] }
 0x249   :  { %834 = vrcp.f32 %v211_v44  ;;  %v223_v48 = vand.u32 2147483648, %v211_v44  ;;  %v221_v50 = vand.u32 2147483647, %v211_v44  ;;  %vm217_vm9 = vweird.f32 %v211_v44 }
 0x24b   :  { %v224_v52 = vor.u32 1.1754944e-38, %v223_v48  ;;  %vm222_vm11 = vcmp.eq.f32.partialorder %v221_v50, 8.507059e+37 }
 0x24f   :  { %v835_v45 = vpop.eup %834 }
 0x250   :  { %v213_v46 = vmul.f32 %v835_v45, %v211_v44  ;;  %vm218_vm8 = vweird.f32 %v835_v45 }
 0x251   :  { %vm219_vm10 = vmor %vm217_vm9, %vm218_vm8 }
 0x252   :  { %v214_v47 = vsub.f32 1.0, %v213_v46 }
 0x254   :  { %v215_v49 = vmul.f32 %v835_v45, %v214_v47 }
 0x256   :  { %v216_v51 = vadd.f32 %v835_v45, %v215_v49 }
 0x258   :  { %v220_v53 = vsel %vm219_vm10, %v835_v45, %v216_v51 }
 0x259   :  { %v225_v55 = vsel %vm222_vm11, %v224_v52, %v220_v53 }
 0x25a   :  { %v230_v56 = vmul.f32 %v228_v54, %v225_v55  ;;  %v261_v63 = vsub.f32 1.0, %v225_v55 }
 0x25c   :  { %232 = vrot.lane.b32.xlu2 %v230_v56, %s958_s9  ;;  %v262_v1 = vmul.f32 %v261_v63, %v180_v38 }
 0x264   :  { %235 = vrot.lane.b32.xlu2 %v183_v39, %s957_s1 }
 0x26c   :  { %319 = vrot.lane.b32.xlu2 %v267_v57, %s957_s1 }
 0x274   :  { %403 = vrot.lane.b32.xlu2 %v1084_v58, %s957_s1 }
 0x27c   :  { %487 = vrot.lane.b32.xlu2 %v1111_v32, %s957_s1 }
 0x284   :  { %571 = vrot.lane.b32.xlu2 %v1115_v33, %s957_s1 }
 0x28c   :  { %655 = vrot.lane.b32.xlu2 %v1126_v42, %s957_s1 }
 0x294   :  { %739 = vrot.lane.b32.xlu2 %v1130_v43, %s957_s1 }
 0x2b6   :  { %v233_v59 = vpop.permute.xlu2 %232 }
 0x2b7   :  { %798 = vmatmul.msk.f32.vlgmr.msrb.gmra.mxu1 %vm99_vm1, %v233_v59 }
 0x2b8   :  { %588 = vmatpush.msrb.mxu1 %v1040_v26 }
 0x2ba   :  { %589 = vmatpush.msrb.mxu1 %v1042_v27 }
 0x2bc   :  { %590 = vmatpush.msrb.mxu1 %v1046_v28 }
 0x2be   :  { %591 = vmatpush.msrb.mxu1 %v1051_v29  ;;  %v236_v60 = vpop.permute.xlu2 %235 }
 0x2c6   :  { %v320_v34 = vpop.permute.xlu2 %319 }
 0x334   :  { %v257_v61 = vpop.f32.mrf.mxu1 }
 0x335   :  { %v258_v62 = vadd.f32 %v257_v61, %v236_v60 }
 0x337   :  { %836 = vtanh.f32 %v258_v62 }
 0x33d   :  { %v837_v0 = vpop.eup %836 }
 0x33e   :  { %v263_v5 = vmul.f32 %v837_v0, %v225_v55 }
 0x340   :  { %v264_v7 = vadd.f32 %v263_v5, %v262_v1 }
 0x342   :  { %311 = vrot.lane.b32.xlu0 %v264_v7, %s956_s2  ;;  %266 = vst.msk [vmem:[#allocation8 + $0x2] sm:$0x3] %vm181_vm7, %v264_v7  ;;  %799 = vmatmul.msk.f32.vlgmr.msrb.gmra.mxu2 %vm99_vm1, %v264_v7 }
 0x343   :  { %619 = vmatpush.msrb.mxu2 %v1003_v2 }
 0x345   :  { %620 = vmatpush.msrb.mxu2 %v1006_v3 }
 0x347   :  { %621 = vmatpush.msrb.mxu2 %v1009_v4 }
 0x349   :  { %622 = vmatpush.msrb.mxu2 %v1020_v6 }
 0x3b4   :  { %v312_v22 = vpop.permute.xlu0 %311 }
 0x3c5   :  { %v288_v8 = vpop.f32.mrf.mxu2 }
 0x3c6   :  { %v291_v9 = vadd.f32 %v288_v8, %v267_v57 }
 0x3c8   :  { %v800_v10 = vmul.f32 -1.442695, %v291_v9 }
 0x3ca   :  { %838 = vpow2.f32 %v800_v10 }
 0x3d0   :  { %v839_v11 = vpop.eup %838 }
 0x3d1   :  { %v295_v12 = vadd.f32 1.0, %v839_v11 }
 0x3d3   :  { %840 = vrcp.f32 %v295_v12  ;;  %v307_v16 = vand.u32 2147483648, %v295_v12  ;;  %v305_v18 = vand.u32 2147483647, %v295_v12  ;;  %vm301_vm13 = vweird.f32 %v295_v12 }
 0x3d5   :  { %v308_v20 = vor.u32 1.1754944e-38, %v307_v16  ;;  %vm306_vm15 = vcmp.eq.f32.partialorder %v305_v18, 8.507059e+37 }
 0x3d9   :  { %v841_v13 = vpop.eup %840 }
 0x3da   :  { %v297_v14 = vmul.f32 %v841_v13, %v295_v12  ;;  %vm302_vm12 = vweird.f32 %v841_v13 }
 0x3db   :  { %vm303_vm14 = vmor %vm301_vm13, %vm302_vm12 }
 0x3dc   :  { %v298_v15 = vsub.f32 1.0, %v297_v14 }
 0x3de   :  { %v299_v17 = vmul.f32 %v841_v13, %v298_v15 }
 0x3e0   :  { %v300_v19 = vadd.f32 %v841_v13, %v299_v17 }
 0x3e2   :  { %v304_v21 = vsel %vm303_vm14, %v841_v13, %v300_v19 }
 0x3e3   :  { %v309_v23 = vsel %vm306_vm15, %v308_v20, %v304_v21 }
 0x3e4   :  { %v314_v24 = vmul.f32 %v312_v22, %v309_v23  ;;  %v345_v37 = vsub.f32 1.0, %v309_v23 }
 0x3e6   :  { %316 = vrot.lane.b32.xlu1 %v314_v24, %s958_s9  ;;  %v346_v40 = vmul.f32 %v345_v37, %v264_v7 }
 0x458   :  { %v317_v30 = vpop.permute.xlu1 %316 }
 0x459   :  { %801 = vmatmul.msk.f32.vlgmr.msrb.gmra.mxu3 %vm99_vm1, %v317_v30 }
 0x45a   :  { %672 = vmatpush.msrb.mxu3 %v1040_v26 }
 0x45c   :  { %673 = vmatpush.msrb.mxu3 %v1042_v27 }
 0x45e   :  { %674 = vmatpush.msrb.mxu3 %v1046_v28 }
 0x460   :  { %675 = vmatpush.msrb.mxu3 %v1051_v29 }
 0x4dc   :  { %v341_v35 = vpop.f32.mrf.mxu3 }
 0x4dd   :  { %v342_v36 = vadd.f32 %v341_v35, %v320_v34 }
 0x4df   :  { %842 = vtanh.f32 %v342_v36 }
 0x4e5   :  { %v843_v38 = vpop.eup %842 }
 0x4e6   :  { %v347_v39 = vmul.f32 %v843_v38, %v309_v23 }
 0x4e8   :  { %v348_v41 = vadd.f32 %v347_v39, %v346_v40 }
 0x4ea   :  { %395 = vrot.lane.b32.xlu0 %v348_v41, %s956_s2  ;;  %350 = vst.msk [vmem:[#allocation8 + $0x4] sm:$0x3] %vm181_vm7, %v348_v41  ;;  %802 = vmatmul.msk.f32.vlgmr.msrb.gmra.mxu0 %vm99_vm1, %v348_v41 }
 0x4eb   :  { %703 = vmatpush.msrb.mxu0 %v1003_v2 }
 0x4ed   :  { %704 = vmatpush.msrb.mxu0 %v1006_v3 }
 0x4ef   :  { %705 = vmatpush.msrb.mxu0 %v1009_v4 }
 0x4f1   :  { %706 = vmatpush.msrb.mxu0 %v1020_v6 }
 0x55c   :  { %v396_v54 = vpop.permute.xlu0 %395 }
 0x567   :  { %v372_v44 = vpop.f32.mrf.mxu0 }
 0x568   :  { %v375_v45 = vadd.f32 %v372_v44, %v1084_v58  ;;  %v404_v58 = vpop.permute.xlu2 %403 }
 0x56a   :  { %v803_v2 = vmul.f32 -1.442695, %v375_v45 }
 0x56c   :  { %844 = vpow2.f32 %v803_v2 }
 0x570   :  { %v488_v20 = vpop.permute.xlu2 %487 }
 0x572   :  { %v845_v3 = vpop.eup %844 }
 0x573   :  { %v379_v46 = vadd.f32 1.0, %v845_v3 }
 0x575   :  { %846 = vrcp.f32 %v379_v46  ;;  %v391_v48 = vand.u32 2147483648, %v379_v46  ;;  %v389_v50 = vand.u32 2147483647, %v379_v46  ;;  %vm385_vm2 = vweird.f32 %v379_v46 }
 0x577   :  { %v392_v52 = vor.u32 1.1754944e-38, %v391_v48  ;;  %vm390_vm4 = vcmp.eq.f32.partialorder %v389_v50, 8.507059e+37 }
 0x578   :  { %v572_v48 = vpop.permute.xlu2 %571 }
 0x57b   :  { %v847_v4 = vpop.eup %846 }
 0x57c   :  { %v381_v6 = vmul.f32 %v847_v4, %v379_v46  ;;  %vm386_vm0 = vweird.f32 %v847_v4 }
 0x57d   :  { %vm387_vm3 = vmor %vm385_vm2, %vm386_vm0 }
 0x57e   :  { %v382_v47 = vsub.f32 1.0, %v381_v6 }
 0x580   :  { %v383_v49 = vmul.f32 %v847_v4, %v382_v47 }
 0x582   :  { %v384_v51 = vadd.f32 %v847_v4, %v383_v49 }
 0x584   :  { %v388_v53 = vsel %vm387_vm3, %v847_v4, %v384_v51 }
 0x585   :  { %v393_v55 = vsel %vm390_vm4, %v392_v52, %v388_v53 }
 0x586   :  { %v398_v56 = vmul.f32 %v396_v54, %v393_v55  ;;  %v429_v61 = vsub.f32 1.0, %v393_v55 }
 0x588   :  { %400 = vrot.lane.b32.xlu1 %v398_v56, %s958_s9  ;;  %v430_v0 = vmul.f32 %v429_v61, %v348_v41 }
 0x5fa   :  { %v401_v57 = vpop.permute.xlu1 %400 }
 0x5fb   :  { %804 = vmatmul.msk.f32.vlgmr.msra.gmra.mxu1 %vm99_vm1, %v401_v57 }
 0x5fc   :  { %756 = vmatpush.msra.mxu1 %v1040_v26 }
 0x5fe   :  { %757 = vmatpush.msra.mxu1 %v1042_v27 }
 0x600   :  { %758 = vmatpush.msra.mxu1 %v1046_v28 }
 0x602   :  { %759 = vmatpush.msra.mxu1 %v1051_v29 }
 0x678   :  { %v425_v59 = vpop.f32.mrf.mxu1 }
 0x679   :  { %v426_v60 = vadd.f32 %v425_v59, %v404_v58 }
 0x67b   :  { %848 = vtanh.f32 %v426_v60 }
 0x681   :  { %v849_v62 = vpop.eup %848 }
 0x682   :  { %v431_v63 = vmul.f32 %v849_v62, %v393_v55 }
 0x684   :  { %v432_v1 = vadd.f32 %v431_v63, %v430_v0 }
 0x686   :  { %479 = vrot.lane.b32.xlu0 %v432_v1, %s956_s2  ;;  %434 = vst.msk [vmem:[#allocation8 + $0x6] sm:$0x3] %vm181_vm7, %v432_v1  ;;  %805 = vmatmul.msk.f32.vlgmr.msra.gmra.mxu2 %vm99_vm1, %v432_v1 }
 0x6f8   :  { %v480_v16 = vpop.permute.xlu0 %479 }
 0x709   :  { %v456_v26 = vpop.f32.mrf.mxu2 }
 0x70a   :  { %v459_v27 = vadd.f32 %v456_v26, %v1111_v32 }
 0x70c   :  { %v806_v28 = vmul.f32 -1.442695, %v459_v27 }
 0x70e   :  { %850 = vpow2.f32 %v806_v28 }
 0x714   :  { %v851_v29 = vpop.eup %850 }
 0x715   :  { %v463_v5 = vadd.f32 1.0, %v851_v29 }
 0x717   :  { %852 = vrcp.f32 %v463_v5  ;;  %v475_v10 = vand.u32 2147483648, %v463_v5  ;;  %v473_v12 = vand.u32 2147483647, %v463_v5  ;;  %vm469_vm6 = vweird.f32 %v463_v5 }
 0x719   :  { %v476_v14 = vor.u32 1.1754944e-38, %v475_v10  ;;  %vm474_vm9 = vcmp.eq.f32.partialorder %v473_v12, 8.507059e+37 }
 0x71d   :  { %v853_v7 = vpop.eup %852 }
 0x71e   :  { %v465_v8 = vmul.f32 %v853_v7, %v463_v5  ;;  %vm470_vm5 = vweird.f32 %v853_v7 }
 0x71f   :  { %vm471_vm8 = vmor %vm469_vm6, %vm470_vm5 }
 0x720   :  { %v466_v9 = vsub.f32 1.0, %v465_v8 }
 0x722   :  { %v467_v11 = vmul.f32 %v853_v7, %v466_v9  ;;  %v656_v9 = vpop.permute.xlu2 %655 }
 0x724   :  { %v468_v13 = vadd.f32 %v853_v7, %v467_v11 }
 0x726   :  { %v472_v15 = vsel %vm471_vm8, %v853_v7, %v468_v13 }
 0x727   :  { %v477_v17 = vsel %vm474_vm9, %v476_v14, %v472_v15 }
 0x728   :  { %v482_v18 = vmul.f32 %v480_v16, %v477_v17  ;;  %v513_v23 = vsub.f32 1.0, %v477_v17 }
 0x72a   :  { %484 = vrot.lane.b32.xlu1 %v482_v18, %s958_s9  ;;  %v514_v30 = vmul.f32 %v513_v23, %v432_v1 }
 0x79c   :  { %v485_v19 = vpop.permute.xlu1 %484 }
 0x79d   :  { %807 = vmatmul.msk.f32.vlgmr.msra.gmra.mxu3 %vm99_vm1, %v485_v19 }
 0x820   :  { %v509_v21 = vpop.f32.mrf.mxu3 }
 0x821   :  { %v510_v22 = vadd.f32 %v509_v21, %v488_v20 }
 0x823   :  { %854 = vtanh.f32 %v510_v22 }
 0x829   :  { %v855_v24 = vpop.eup %854 }
 0x82a   :  { %v515_v25 = vmul.f32 %v855_v24, %v477_v17 }
 0x82c   :  { %v516_v31 = vadd.f32 %v515_v25, %v514_v30 }
 0x82e   :  { %563 = vrot.lane.b32.xlu0 %v516_v31, %s956_s2  ;;  %518 = vst.msk [vmem:[#allocation8 + $0x8] sm:$0x3] %vm181_vm7, %v516_v31  ;;  %808 = vmatmul.msk.f32.vlgmr.msra.gmra.mxu0 %vm99_vm1, %v516_v31 }
 0x8a0   :  { %v564_v4 = vpop.permute.xlu0 %563 }
 0x8ab   :  { %v540_v32 = vpop.f32.mrf.mxu0 }
 0x8ac   :  { %v543_v34 = vadd.f32 %v540_v32, %v1115_v33 }
 0x8ae   :  { %v809_v35 = vmul.f32 -1.442695, %v543_v34 }
 0x8b0   :  { %856 = vpow2.f32 %v809_v35 }
 0x8b6   :  { %v857_v36 = vpop.eup %856 }
 0x8b7   :  { %v547_v37 = vadd.f32 1.0, %v857_v36 }
 0x8b9   :  { %858 = vrcp.f32 %v547_v37  ;;  %v559_v41 = vand.u32 2147483648, %v547_v37  ;;  %v557_v45 = vand.u32 2147483647, %v547_v37  ;;  %vm553_vm11 = vweird.f32 %v547_v37 }
 0x8bb   :  { %v560_v3 = vor.u32 1.1754944e-38, %v559_v41  ;;  %vm558_vm13 = vcmp.eq.f32.partialorder %v557_v45, 8.507059e+37 }
 0x8bf   :  { %v859_v38 = vpop.eup %858 }
 0x8c0   :  { %v549_v39 = vmul.f32 %v859_v38, %v547_v37  ;;  %vm554_vm10 = vweird.f32 %v859_v38 }
 0x8c1   :  { %vm555_vm12 = vmor %vm553_vm11, %vm554_vm10 }
 0x8c2   :  { %v550_v40 = vsub.f32 1.0, %v549_v39  ;;  %v740_v39 = vpop.permute.xlu2 %739 }
 0x8c4   :  { %v551_v44 = vmul.f32 %v859_v38, %v550_v40 }
 0x8c6   :  { %v552_v2 = vadd.f32 %v859_v38, %v551_v44 }
 0x8c8   :  { %v556_v46 = vsel %vm555_vm12, %v859_v38, %v552_v2 }
 0x8c9   :  { %v561_v33 = vsel %vm558_vm13, %v560_v3, %v556_v46 }
 0x8ca   :  { %v566_v6 = vmul.f32 %v564_v4, %v561_v33  ;;  %v597_v51 = vsub.f32 1.0, %v561_v33 }
 0x8cc   :  { %568 = vrot.lane.b32.xlu1 %v566_v6, %s958_s9  ;;  %v598_v54 = vmul.f32 %v597_v51, %v516_v31 }
 0x93e   :  { %v569_v47 = vpop.permute.xlu1 %568 }
 0x93f   :  { %810 = vmatmul.msk.f32.vlgmr.msrb.gmra.mxu1 %vm99_vm1, %v569_v47 }
 0x9bc   :  { %v593_v49 = vpop.f32.mrf.mxu1 }
 0x9bd   :  { %v594_v50 = vadd.f32 %v593_v49, %v572_v48 }
 0x9bf   :  { %860 = vtanh.f32 %v594_v50 }
 0x9c5   :  { %v861_v52 = vpop.eup %860 }
 0x9c6   :  { %v599_v53 = vmul.f32 %v861_v52, %v561_v33 }
 0x9c8   :  { %v600_v55 = vadd.f32 %v599_v53, %v598_v54 }
 0x9ca   :  { %647 = vrot.lane.b32.xlu0 %v600_v55, %s956_s2  ;;  %602 = vst.msk [vmem:[#allocation8 + $0xa] sm:$0x3] %vm181_vm7, %v600_v55  ;;  %811 = vmatmul.msk.f32.vlgmr.msrb.gmra.mxu2 %vm99_vm1, %v600_v55 }
 0xa3c   :  { %v648_v5 = vpop.permute.xlu0 %647 }
 0xa4d   :  { %v624_v56 = vpop.f32.mrf.mxu2 }
 0xa4e   :  { %v627_v57 = vadd.f32 %v624_v56, %v1126_v42 }
 0xa50   :  { %v812_v58 = vmul.f32 -1.442695, %v627_v57 }
 0xa52   :  { %862 = vpow2.f32 %v812_v58 }
 0xa58   :  { %v863_v59 = vpop.eup %862 }
 0xa59   :  { %v631_v60 = vadd.f32 1.0, %v863_v59 }
 0xa5b   :  { %864 = vrcp.f32 %v631_v60  ;;  %v643_v0 = vand.u32 2147483648, %v631_v60  ;;  %v641_v26 = vand.u32 2147483647, %v631_v60  ;;  %vm637_vm15 = vweird.f32 %v631_v60 }
 0xa5d   :  { %v644_v28 = vor.u32 1.1754944e-38, %v643_v0  ;;  %vm642_vm2 = vcmp.eq.f32.partialorder %v641_v26, 8.507059e+37 }
 0xa61   :  { %v865_v61 = vpop.eup %864 }
 0xa62   :  { %v633_v62 = vmul.f32 %v865_v61, %v631_v60  ;;  %vm638_vm14 = vweird.f32 %v865_v61 }
 0xa63   :  { %vm639_vm0 = vmor %vm637_vm15, %vm638_vm14 }
 0xa64   :  { %v634_v63 = vsub.f32 1.0, %v633_v62 }
 0xa66   :  { %v635_v1 = vmul.f32 %v865_v61, %v634_v63 }
 0xa68   :  { %v636_v27 = vadd.f32 %v865_v61, %v635_v1 }
 0xa6a   :  { %v640_v29 = vsel %vm639_vm0, %v865_v61, %v636_v27 }
 0xa6b   :  { %v645_v42 = vsel %vm642_vm2, %v644_v28, %v640_v29 }
 0xa6c   :  { %v650_v7 = vmul.f32 %v648_v5, %v645_v42  ;;  %v681_v12 = vsub.f32 1.0, %v645_v42 }
 0xa6e   :  { %652 = vrot.lane.b32.xlu1 %v650_v7, %s958_s9  ;;  %v682_v15 = vmul.f32 %v681_v12, %v600_v55 }
 0xae0   :  { %v653_v8 = vpop.permute.xlu1 %652 }
 0xae1   :  { %813 = vmatmul.msk.f32.vlgmr.msrb.gmra.mxu3 %vm99_vm1, %v653_v8 }
 0xb64   :  { %v677_v10 = vpop.f32.mrf.mxu3 }
 0xb65   :  { %v678_v11 = vadd.f32 %v677_v10, %v656_v9 }
 0xb67   :  { %866 = vtanh.f32 %v678_v11 }
 0xb6d   :  { %v867_v13 = vpop.eup %866 }
 0xb6e   :  { %v683_v14 = vmul.f32 %v867_v13, %v645_v42 }
 0xb70   :  { %v684_v16 = vadd.f32 %v683_v14, %v682_v15 }
 0xb72   :  { %731 = vrot.lane.b32.xlu0 %v684_v16, %s956_s2  ;;  %686 = vst.msk [vmem:[#allocation8 + $0xc] sm:$0x3] %vm181_vm7, %v684_v16  ;;  %814 = vmatmul.msk.f32.vlgmr.msrb.gmra.mxu0 %vm99_vm1, %v684_v16 }
 0xbe4   :  { %v732_v36 = vpop.permute.xlu0 %731 }
 0xbef   :  { %v708_v17 = vpop.f32.mrf.mxu0 }
 0xbf0   :  { %v711_v18 = vadd.f32 %v708_v17, %v1130_v43 }
 0xbf2   :  { %v815_v19 = vmul.f32 -1.442695, %v711_v18 }
 0xbf4   :  { %868 = vpow2.f32 %v815_v19 }
 0xbfa   :  { %v869_v20 = vpop.eup %868 }
 0xbfb   :  { %v715_v21 = vadd.f32 1.0, %v869_v20 }
 0xbfd   :  { %870 = vrcp.f32 %v715_v21  ;;  %v727_v25 = vand.u32 2147483648, %v715_v21  ;;  %v725_v31 = vand.u32 2147483647, %v715_v21  ;;  %vm721_vm4 = vweird.f32 %v715_v21 }
 0xbff   :  { %v728_v34 = vor.u32 1.1754944e-38, %v727_v25  ;;  %vm726_vm6 = vcmp.eq.f32.partialorder %v725_v31, 8.507059e+37 }
 0xc03   :  { %v871_v22 = vpop.eup %870 }
 0xc04   :  { %v717_v23 = vmul.f32 %v871_v22, %v715_v21  ;;  %vm722_vm3 = vweird.f32 %v871_v22 }
 0xc05   :  { %vm723_vm5 = vmor %vm721_vm4, %vm722_vm3 }
 0xc06   :  { %v718_v24 = vsub.f32 1.0, %v717_v23 }
 0xc08   :  { %v719_v30 = vmul.f32 %v871_v22, %v718_v24 }
 0xc0a   :  { %v720_v32 = vadd.f32 %v871_v22, %v719_v30 }
 0xc0c   :  { %v724_v35 = vsel %vm723_vm5, %v871_v22, %v720_v32 }
 0xc0d   :  { %v729_v43 = vsel %vm726_vm6, %v728_v34, %v724_v35 }
 0xc0e   :  { %v734_v37 = vmul.f32 %v732_v36, %v729_v43  ;;  %v765_v44 = vsub.f32 1.0, %v729_v43 }
 0xc10   :  { %736 = vrot.lane.b32.xlu1 %v734_v37, %s958_s9  ;;  %v766_v2 = vmul.f32 %v765_v44, %v684_v16 }
 0xc82   :  { %v737_v38 = vpop.permute.xlu1 %736 }
 0xc83   :  { %816 = vmatmul.msk.f32.vlgmr.msra.gmra.mxu1 %vm99_vm1, %v737_v38 }
 0xd00   :  { %v761_v40 = vpop.f32.mrf.mxu1 }
 0xd01   :  { %v762_v41 = vadd.f32 %v761_v40, %v740_v39 }
 0xd03   :  { %872 = vtanh.f32 %v762_v41 }
 0xd09   :  { %v873_v45 = vpop.eup %872 }
 0xd0a   :  { %v767_v3 = vmul.f32 %v873_v45, %v729_v43 }
 0xd0c   :  { %v768_v46 = vadd.f32 %v767_v3, %v766_v2 }
 0xd0e   :  { %770 = vst.msk [vmem:[#allocation8 + $0xe] sm:$0x3] %vm181_vm7, %v768_v46 }
 0xd0f   :  { %783 = dma.vmem_to_hbm [thread:$0]  %s776_s12, 256, %s778_s15, [#allocation5], %s956_s2, %s956_s2, %s960_s16  }
 0xd10   :  { %950 = dma.done.wait [#allocation5], 256  }
 0xd11   :  { %951 = vsyncadd [#allocation5], 4294967040 }
 0xd12   :  { %788 = vsyncpa [#allocation4], 1 }
 0xd13   :  { %789 = vsyncpa [#allocation7], 1 }
 0xd14   :  { %790 = vsyncpa [#allocation5], 1 }

</bundles_post_ra>
